<compile_context>
chip_gen: v6e
topology: v6e:2x2x1
jax: 0.10.0
libtpu: 0.0.40
codegen_flags: <defaults>
</compile_context>

<pallas_src>
import functools

import numpy as np
import jax
import jax.numpy as jnp
from jax import lax
from jax.experimental import pallas as pl
from jax.experimental.pallas import tpu as pltpu


def _round_up(v, m):
    return (v + m - 1) // m * m


def _make_scat1d_filters(N, J, Q1):
    """Deterministic Morlet-like first-order scattering filter bank (numpy glue).

    Returns:
      psi_re, psi_im: (L, N, N) float32 circular-convolution matrices
                      (real / imag part of the analytic band-pass psi_l).
      Phi:            (N, Tout) float32 lowpass + subsample-by-2^J operator.
    """
    L = J * Q1
    sub = 2 ** J
    assert N % sub == 0, "shape must be divisible by 2**J"
    Tout = N // sub

    freqs = np.arange(N) / N                       # cycles / sample
    xi_max = 0.35
    xis = xi_max * (2.0 ** (-np.arange(L) / Q1))   # geometric center frequencies
    sigmas = xis * (2.0 ** (1.0 / Q1) - 1.0)       # proportional bandwidths

    m = np.arange(N)
    conv_idx = (m[None, :] - m[:, None]) % N       # W[m, n] = psi[(n - m) % N]

    psi_re = np.empty((L, N, N), np.float32)
    psi_im = np.empty((L, N, N), np.float32)
    for l in range(L):
        psi_hat = np.exp(-((freqs - xis[l]) ** 2) / (2.0 * sigmas[l] ** 2))
        psi = np.fft.ifft(psi_hat)                 # complex analytic band-pass
        psi_re[l] = psi.real[conv_idx]
        psi_im[l] = psi.imag[conv_idx]

    sigma_phi = 0.35 / sub
    f_sym = np.minimum(freqs, 1.0 - freqs)
    phi_hat = np.exp(-(f_sym ** 2) / (2.0 * sigma_phi ** 2))
    phi = np.real(np.fft.ifft(phi_hat))
    t = np.arange(Tout) * sub
    Phi = phi[(t[None, :] - m[:, None]) % N].astype(np.float32)   # (N, Tout)

    return psi_re, psi_im, Phi


def _scat1d_loss_kernel(sig_ref, w_ref, phi_ref, out_ref, *, p, tb, lf, ncol):
    """Grid = (filter split s, batch_tile bi, filter group g).

    sig_ref: (1, 2*TB, N)            bf16  rows [0:TB) = x_target tile, [TB:2TB) = x tile
    w_ref:   (1, N, 2*LF*Ncol)       bf16  fused [re_0..re_{LF-1} | im_0..im_{LF-1}]
    phi_ref: (Ncol, Tout_pad)        bf16  lowpass + subsample (zero-padded)
    out_ref: (1, TB, Tout_pad)       f32   per-lane accumulator of |d|^p over groups
    """
    g = pl.program_id(2)

    @pl.when(g == 0)
    def _():
        out_ref[...] = jnp.zeros_like(out_ref)

    sig = sig_ref[0]                                                  # (2TB, N) bf16
    y = jnp.dot(sig, w_ref[0], preferred_element_type=jnp.float32)    # (2TB, 2*LF*Ncol) f32
    half = lf * ncol
    re = y[:, :half]                                                  # lane-aligned views
    im = y[:, half:]
    # TODO(synk): add a small eps inside the sqrt if this loss is differentiated.
    u = jnp.sqrt(re * re + im * im)                                   # (2TB, LF*Ncol) f32
    ud = (u[:tb] - u[tb:]).astype(jnp.bfloat16)                       # (TB, LF*Ncol)  S1(xt)-S1(x)
    phi = phi_ref[...]                                                # (Ncol, Tout_pad) bf16

    acc = None
    for j in range(lf):                                               # static unroll, aligned slices
        d = jnp.dot(ud[:, j * ncol:(j + 1) * ncol], phi,
                    preferred_element_type=jnp.float32)               # (TB, Tout_pad)
        if p == 2:
            term = d * d
        elif p == 1:
            term = jnp.abs(d)
        elif isinstance(p, int):
            term = lax.integer_pow(jnp.abs(d), p)                     # VPU, keeps EUP free
        else:
            term = jnp.abs(d) ** p
        acc = term if acc is None else acc + term

    out_ref[...] += acc[None, :, :]


def scat1d_loss(x, x_target, *, shape, J, Q1, Q2=1, T=None, max_order=1, p=2):
    """Pallas implementation of Scat1DLoss.forward (max_order=1)."""
    assert max_order == 1, "only first-order scattering is implemented"
    assert x.ndim == x_target.ndim == 3
    assert x.shape[1] == x_target.shape[1] == 1
    assert x.shape[2] == x_target.shape[2] == shape

    B, _, N = x.shape
    psi_re, psi_im, Phi_np = _make_scat1d_filters(N, J, Q1)
    L = psi_re.shape[0]
    Tout = Phi_np.shape[1]
    Ncol = _round_up(N, 128)          # lane-aligned per-filter re/im column blocks
    Tout_pad = _round_up(Tout, 128)

    # Batch tiling: sublane-aligned tile, up to 256 rows (bigger tiles halve the
    # per-tile weight stream that binds v6e/v7x).
    TB = min(256, _round_up(B, 8))
    B_tiles = pl.cdiv(B, TB)
    Bp = B_tiles * TB

    # v7x has 2 TensorCores: with a single batch tile, split the filter bank into
    # two "parallel" halves so both cores get work (neutral on 1-TC v5e/v6e).
    NSPLIT = 2 if (B_tiles == 1 and L >= 2) else 1
    L_per = -(-L // NSPLIT)

    # Pack LF filters per reduction grid step (amortizes per-step overhead, widens
    # the MXU output, fewer DMA descriptors), bounded by a VMEM budget covering the
    # double-buffered bf16 weight block and the f32 intermediates it produces.
    per_filter_bytes = (2 * (N * 2 * Ncol * 2)          # bf16 weight block (double-buffered)
                        + (2 * TB) * (2 * Ncol) * 4     # f32 y intermediate
                        + (2 * TB) * Ncol * 4)          # f32 u intermediate
    LF = max(1, min(L_per, int((20 << 20) // max(per_filter_bytes, 1))))
    G = -(-L_per // LF)
    total_groups = NSPLIT * G

    # Fused bf16 weight: per group, columns [re_0..re_{LF-1} | im_0..im_{LF-1}],
    # each Ncol wide (zero-padded beyond N); padding filters are all-zero and
    # contribute nothing to the loss.
    W_np = np.zeros((total_groups, N, 2 * LF * Ncol), np.float32)
    for sg in range(total_groups):
        for j in range(LF):
            f = sg * LF + j
            if f < L:
                W_np[sg, :, j * Ncol:j * Ncol + N] = psi_re[f]
                W_np[sg, :, LF * Ncol + j * Ncol:LF * Ncol + j * Ncol + N] = psi_im[f]
    W = jnp.asarray(W_np, dtype=jnp.bfloat16)                         # (groups, N, 2*LF*Ncol)

    Phi_pad = np.zeros((Ncol, Tout_pad), np.float32)
    Phi_pad[:N, :Tout] = Phi_np
    Phi = jnp.asarray(Phi_pad, dtype=jnp.bfloat16)                    # (Ncol, Tout_pad)

    # Signals: pad batch to Bp, stack x_target over x along the matmul M axis and
    # pre-cast to bf16 on the host (no per-step cast, half the DMA bytes).
    def pad_rows(a):
        a = a.astype(jnp.float32).reshape(a.shape[0], N)
        if Bp > a.shape[0]:
            a = jnp.pad(a, ((0, Bp - a.shape[0]), (0, 0)))
        return a.reshape(B_tiles, TB, N)

    stacked = jnp.concatenate([pad_rows(x_target), pad_rows(x)],
                              axis=1).astype(jnp.bfloat16)            # (B_tiles, 2TB, N)

    kernel = functools.partial(_scat1d_loss_kernel, p=p, tb=TB, lf=LF, ncol=Ncol)

    # VMEM budget (double-buffered ins + out + intermediates); raise the scoped
    # limit only when needed and clamp to this part's physical capacity.
    vmem_est = (2 * (2 * TB * N * 2)
                + 2 * (N * 2 * LF * Ncol * 2)
                + 2 * (Ncol * Tout_pad * 2)
                + 2 * (TB * Tout_pad * 4)
                + (2 * TB) * (2 * LF * Ncol) * 4 * 2
                + (1 << 20))
    vmem_limit = None
    if vmem_est > (30 << 20):
        try:
            phys = pltpu.get_tpu_info().vmem_capacity_bytes
        except Exception:
            phys = 64 << 20
        # TODO(synk): if this clamp ever binds (N >~ 2048 on v7x), add a column-tile
        # grid axis over the frequency dimension instead of raising the limit.
        vmem_limit = min(vmem_est, phys - (2 << 20))

    per_lane = pl.pallas_call(
        kernel,
        out_shape=jax.ShapeDtypeStruct((NSPLIT, Bp, Tout_pad), jnp.float32),
        grid_spec=pltpu.PrefetchScalarGridSpec(
            num_scalar_prefetch=0,
            grid=(NSPLIT, B_tiles, G),                    # filter-group axis = reduction (last)
            in_specs=[
                pl.BlockSpec((1, 2 * TB, N), lambda s, bi, g: (bi, 0, 0)),          # signals (bf16)
                pl.BlockSpec((1, N, 2 * LF * Ncol), lambda s, bi, g: (s * G + g, 0, 0)),  # fused W
                pl.BlockSpec((Ncol, Tout_pad), lambda s, bi, g: (0, 0)),             # Phi (bf16)
            ],
            out_specs=pl.BlockSpec((1, TB, Tout_pad), lambda s, bi, g: (s, bi, 0)),
        ),
        compiler_params=pltpu.CompilerParams(
            dimension_semantics=("parallel", "parallel", "arbitrary"),
            vmem_limit_bytes=vmem_limit),
    )(stacked, W, Phi)

    # per_lane[s, b, t] = sum over the s-th filter half of |S1_l(xt)[b,t] - S1_l(x)[b,t]|^p
    # (padded lanes/rows/filters contribute 0).
    ssum = jnp.sum(per_lane[:, :B, :], axis=(0, 2))                   # (B,)
    dist = jnp.sqrt(ssum) if p == 2 else ssum ** (1.0 / p)
    # channel dim is 1, so mean over (batch, channel) == mean over batch.
    return jnp.mean(dist)


if __name__ == "__main__":
    # Small, module-consistent shapes: signals (B=2, 1, N=64), J=3, Q1=4.
    N, J, Q1 = 64, 3, 4
    key = jax.random.PRNGKey(0)
    k1, k2 = jax.random.split(key)
    x = jax.random.normal(k1, (2, 1, N), dtype=jnp.float32)
    x_target = jax.random.normal(k2, (2, 1, N), dtype=jnp.float32)

    loss = scat1d_loss(x, x_target, shape=N, J=J, Q1=Q1, max_order=1, p=2)
    jax.block_until_ready(loss)
    assert loss.shape == () and bool(jnp.isfinite(loss))
    print("KERNEL_OK")
</pallas_src>

<mosaic_0001>
module attributes {stable_mosaic.version = 11 : i64} {
  func.func @_scat1d_loss_kernel(%arg0: i32, %arg1: i32, %arg2: i32, %arg3: memref<1x16x64xbf16, #tpu.memory_space<vmem>>, %arg4: memref<1x64x1536xbf16, #tpu.memory_space<vmem>>, %arg5: memref<128x128xbf16, #tpu.memory_space<vmem>>, %arg6: memref<1x8x128xf32, #tpu.memory_space<vmem>>) attributes {dimension_semantics = [#tpu.dimension_semantics<parallel>, #tpu.dimension_semantics<parallel>, #tpu.dimension_semantics<arbitrary>], iteration_bounds = array<i64: 2, 1, 1>, scalar_prefetch = 0 : i64, scratch_operands = 0 : i64, tpu.core_type = #tpu.core_type<tc>, window_params = [{transform_indices = @transform_0, window_bounds = array<i64: 1, 16, 64>}, {transform_indices = @transform_1, window_bounds = array<i64: 1, 64, 1536>}, {pipeline_mode = #tpu.pipeline_mode<synchronous>, transform_indices = @transform_2, window_bounds = array<i64: 128, 128>}, {transform_indices = @transform_3, window_bounds = array<i64: 1, 8, 128>}]} {
    %c0_i32 = arith.constant 0 : i32
    %0 = arith.cmpi eq, %arg2, %c0_i32 : i32
    %1 = arith.extui %0 : i1 to i32
    %c0_i32_0 = arith.constant 0 : i32
    %2 = arith.cmpi ne, %1, %c0_i32_0 : i32
    scf.if %2 {
      %cst_20 = arith.constant 0.000000e+00 : f32
      %46 = vector.broadcast %cst_20 : f32 to vector<1x8x128xf32>
      %c0_21 = arith.constant 0 : index
      %c0_22 = arith.constant 0 : index
      %c0_23 = arith.constant 0 : index
      %47 = vector.load %arg6[%c0_21, %c0_22, %c0_23] : memref<1x8x128xf32, #tpu.memory_space<vmem>>, vector<1x8x128xf32>
      tpu.vector_store %arg6[%c0_21, %c0_22, %c0_23], %46 {strides = array<i32>} : memref<1x8x128xf32, #tpu.memory_space<vmem>>, vector<1x8x128xf32>,
    } else {
    }
    %c0 = arith.constant 0 : index
    %c0_1 = arith.constant 0 : index
    %c0_2 = arith.constant 0 : index
    %3 = vector.load %arg3[%c0, %c0_1, %c0_2] : memref<1x16x64xbf16, #tpu.memory_space<vmem>>, vector<1x16x64xbf16>
    %4 = vector.shape_cast %3 : vector<1x16x64xbf16> to vector<16x64xbf16>
    %c0_3 = arith.constant 0 : index
    %c0_4 = arith.constant 0 : index
    %c0_5 = arith.constant 0 : index
    %5 = vector.load %arg4[%c0_3, %c0_4, %c0_5] : memref<1x64x1536xbf16, #tpu.memory_space<vmem>>, vector<1x64x1536xbf16>
    %6 = vector.shape_cast %5 : vector<1x64x1536xbf16> to vector<64x1536xbf16>
    %cst = arith.constant dense<0.000000e+00> : vector<16x1536xf32>
    %7 = tpu.matmul %4, %6, %cst {dimension_numbers = #tpu.dot_dimension_numbers<[1], [0], [0], [1], [0, 0, 1, 1], [], []>} : vector<16x64xbf16>, vector<64x1536xbf16>, vector<16x1536xf32> -> vector<16x1536xf32>
    %8 = vector.extract_strided_slice %7 {offsets = [0, 0], sizes = [16, 768], strides = [1, 1]} : vector<16x1536xf32> to vector<16x768xf32>
    %9 = vector.extract_strided_slice %7 {offsets = [0, 768], sizes = [16, 768], strides = [1, 1]} : vector<16x1536xf32> to vector<16x768xf32>
    %10 = arith.mulf %8, %8 : vector<16x768xf32>
    %11 = arith.mulf %9, %9 : vector<16x768xf32>
    %12 = arith.addf %10, %11 : vector<16x768xf32>
    %13 = math.sqrt %12 : vector<16x768xf32>
    %14 = vector.extract_strided_slice %13 {offsets = [0, 0], sizes = [8, 768], strides = [1, 1]} : vector<16x768xf32> to vector<8x768xf32>
    %15 = vector.extract_strided_slice %13 {offsets = [8, 0], sizes = [8, 768], strides = [1, 1]} : vector<16x768xf32> to vector<8x768xf32>
    %16 = arith.subf %14, %15 : vector<8x768xf32>
    %17 = arith.truncf %16 : vector<8x768xf32> to vector<8x768xbf16>
    %c0_6 = arith.constant 0 : index
    %c0_7 = arith.constant 0 : index
    %18 = vector.load %arg5[%c0_6, %c0_7] : memref<128x128xbf16, #tpu.memory_space<vmem>>, vector<128x128xbf16>
    %19 = vector.extract_strided_slice %17 {offsets = [0, 0], sizes = [8, 128], strides = [1, 1]} : vector<8x768xbf16> to vector<8x128xbf16>
    %cst_8 = arith.constant dense<0.000000e+00> : vector<8x128xf32>
    %20 = tpu.matmul %19, %18, %cst_8 {dimension_numbers = #tpu.dot_dimension_numbers<[1], [0], [0], [1], [0, 0, 1, 1], [], []>} : vector<8x128xbf16>, vector<128x128xbf16>, vector<8x128xf32> -> vector<8x128xf32>
    %21 = arith.mulf %20, %20 : vector<8x128xf32>
    %22 = vector.extract_strided_slice %17 {offsets = [0, 128], sizes = [8, 128], strides = [1, 1]} : vector<8x768xbf16> to vector<8x128xbf16>
    %cst_9 = arith.constant dense<0.000000e+00> : vector<8x128xf32>
    %23 = tpu.matmul %22, %18, %cst_9 {dimension_numbers = #tpu.dot_dimension_numbers<[1], [0], [0], [1], [0, 0, 1, 1], [], []>} : vector<8x128xbf16>, vector<128x128xbf16>, vector<8x128xf32> -> vector<8x128xf32>
    %24 = arith.mulf %23, %23 : vector<8x128xf32>
    %25 = arith.addf %21, %24 : vector<8x128xf32>
    %26 = vector.extract_strided_slice %17 {offsets = [0, 256], sizes = [8, 128], strides = [1, 1]} : vector<8x768xbf16> to vector<8x128xbf16>
    %cst_10 = arith.constant dense<0.000000e+00> : vector<8x128xf32>
    %27 = tpu.matmul %26, %18, %cst_10 {dimension_numbers = #tpu.dot_dimension_numbers<[1], [0], [0], [1], [0, 0, 1, 1], [], []>} : vector<8x128xbf16>, vector<128x128xbf16>, vector<8x128xf32> -> vector<8x128xf32>
    %28 = arith.mulf %27, %27 : vector<8x128xf32>
    %29 = arith.addf %25, %28 : vector<8x128xf32>
    %30 = vector.extract_strided_slice %17 {offsets = [0, 384], sizes = [8, 128], strides = [1, 1]} : vector<8x768xbf16> to vector<8x128xbf16>
    %cst_11 = arith.constant dense<0.000000e+00> : vector<8x128xf32>
    %31 = tpu.matmul %30, %18, %cst_11 {dimension_numbers = #tpu.dot_dimension_numbers<[1], [0], [0], [1], [0, 0, 1, 1], [], []>} : vector<8x128xbf16>, vector<128x128xbf16>, vector<8x128xf32> -> vector<8x128xf32>
    %32 = arith.mulf %31, %31 : vector<8x128xf32>
    %33 = arith.addf %29, %32 : vector<8x128xf32>
    %34 = vector.extract_strided_slice %17 {offsets = [0, 512], sizes = [8, 128], strides = [1, 1]} : vector<8x768xbf16> to vector<8x128xbf16>
    %cst_12 = arith.constant dense<0.000000e+00> : vector<8x128xf32>
    %35 = tpu.matmul %34, %18, %cst_12 {dimension_numbers = #tpu.dot_dimension_numbers<[1], [0], [0], [1], [0, 0, 1, 1], [], []>} : vector<8x128xbf16>, vector<128x128xbf16>, vector<8x128xf32> -> vector<8x128xf32>
    %36 = arith.mulf %35, %35 : vector<8x128xf32>
    %37 = arith.addf %33, %36 : vector<8x128xf32>
    %38 = vector.extract_strided_slice %17 {offsets = [0, 640], sizes = [8, 128], strides = [1, 1]} : vector<8x768xbf16> to vector<8x128xbf16>
    %cst_13 = arith.constant dense<0.000000e+00> : vector<8x128xf32>
    %39 = tpu.matmul %38, %18, %cst_13 {dimension_numbers = #tpu.dot_dimension_numbers<[1], [0], [0], [1], [0, 0, 1, 1], [], []>} : vector<8x128xbf16>, vector<128x128xbf16>, vector<8x128xf32> -> vector<8x128xf32>
    %40 = arith.mulf %39, %39 : vector<8x128xf32>
    %41 = arith.addf %37, %40 : vector<8x128xf32>
    %c0_14 = arith.constant 0 : index
    %c0_15 = arith.constant 0 : index
    %c0_16 = arith.constant 0 : index
    %42 = vector.load %arg6[%c0_14, %c0_15, %c0_16] : memref<1x8x128xf32, #tpu.memory_space<vmem>>, vector<1x8x128xf32>
    %43 = vector.shape_cast %41 : vector<8x128xf32> to vector<1x8x128xf32>
    %44 = arith.addf %42, %43 : vector<1x8x128xf32>
    %c0_17 = arith.constant 0 : index
    %c0_18 = arith.constant 0 : index
    %c0_19 = arith.constant 0 : index
    %45 = vector.load %arg6[%c0_17, %c0_18, %c0_19] : memref<1x8x128xf32, #tpu.memory_space<vmem>>, vector<1x8x128xf32>
    tpu.vector_store %arg6[%c0_17, %c0_18, %c0_19], %44 {strides = array<i32>} : memref<1x8x128xf32, #tpu.memory_space<vmem>>, vector<1x8x128xf32>,
    return
  }
  func.func @transform_0(%arg0: i32, %arg1: i32, %arg2: i32) -> (i32, i32, i32) {
    %c0_i32 = arith.constant 0 : i32
    %c0_i32_0 = arith.constant 0 : i32
    %c0_i32_1 = arith.constant 0 : i32
    return %arg1, %c0_i32, %c0_i32_0 : i32, i32, i32
  }
  func.func @transform_1(%arg0: i32, %arg1: i32, %arg2: i32) -> (i32, i32, i32) {
    %c1_i32 = arith.constant 1 : i32
    %0 = arith.muli %arg0, %c1_i32 : i32
    %1 = arith.addi %0, %arg2 : i32
    %c0_i32 = arith.constant 0 : i32
    %c0_i32_0 = arith.constant 0 : i32
    %c0_i32_1 = arith.constant 0 : i32
    return %1, %c0_i32, %c0_i32_0 : i32, i32, i32
  }
  func.func @transform_2(%arg0: i32, %arg1: i32, %arg2: i32) -> (i32, i32) {
    %c0_i32 = arith.constant 0 : i32
    %c0_i32_0 = arith.constant 0 : i32
    %c0_i32_1 = arith.constant 0 : i32
    return %c0_i32, %c0_i32_0 : i32, i32
  }
  func.func @transform_3(%arg0: i32, %arg1: i32, %arg2: i32) -> (i32, i32, i32) {
    %c0_i32 = arith.constant 0 : i32
    %c0_i32_0 = arith.constant 0 : i32
    return %arg0, %arg1, %c0_i32 : i32, i32, i32
  }
}

</mosaic_0001>

<bundles_post_ra>
// kernel: tpu_custom_call.1
= control target key start
LH: loop header
LB: loop body
LE: loop exit
PB: predicated region body
PF: predicated region fallthrough
CT: control target
= control target key end

     0   :  { %s2494_s0 = inlined_call_operand.hbm [shape: bf16[1,16,64], index: 0, kind: input, shape index: {}]   ;;  %s2495_s1 = inlined_call_operand.hbm [shape: bf16[2,64,1536], index: 1, kind: input, shape index: {}]   ;;  %s2496_s2 = inlined_call_operand.hbm [shape: bf16[128,128], index: 2, kind: input, shape index: {}]   ;;  %s2497_s3 = inlined_call_operand.hbm [shape: f32[2,8,128], index: 3, kind: output, shape index: {}]  }
   0x1   :  { %2500 = sst [smem:[#allocation13_spill]] %s2494_s0 }
   0x2   :  { %8 = vsyncpa [#allocation3], 0 }
   0x3   :  { %9 = vsyncpa [#allocation6], 0 }
   0x4   :  { %11 = vsyncpa [#allocation6 + $0x1], 0 }
   0x5   :  { %12 = vsyncpa [#allocation4], 0 }
   0x6   :  { %14 = vsyncpa [#allocation4 + $0x1], 0  ;;  %s2036_s12 = smov 0   ;;  %s2038_s13 = smov 0  }
   0x7   :  { %s2040_s14 = smov 0   ;;  %s2042_s15 = smov 0  }
   0x8   :  { %s2044_s16 = smov 0   ;;  %s2046_s17 = smov 0  }
   0x9 LB: > { %s2067_s18 = sadd.s32 4294967295, %s2003_s17   ;;  %s1386_s19 = sadd.s32 4294967294, %s2003_s17   ;;  %s2003_s17 = sphi %s2046_s17, %s20_s17   ;;  %s1999_s16 = sphi %s2044_s16, %s2520_s16   ;;  %s1995_s15 = sphi %s2042_s15, %s2519_s15   ;;  %s1991_s14 = sphi %s2040_s14, %s2518_s14   ;;  %s1987_s13 = sphi %s2038_s13, %s2517_s13   ;;  %s1983_s12 = sphi %s2036_s12, %s2516_s12  }
   0xa   : > { %s74_s20 = sadd.s32 1, %s1991_s14  ;;  %p81_p0 = scmp.ne.s32.totalorder %s1991_s14, %s1987_s13 }
   0xb   : > { %p82_p1 = scmp.eq.s32.totalorder %s2003_s17, 0  ;;  %p87_p2 = scmp.ne.s32.totalorder %s1987_s13, %s1983_s12 }
   0xc   : > { %p2498_p3 = scmp.eq.s32.totalorder %s2067_s18, 0  ;;  %p134_p4 = scmp.eq.s32.totalorder %s2067_s18, 1 }
   0xd   : > { %p2078_p5 = por %p82_p1, %p81_p0  ;;  %p140_p6 = scmp.eq.s32.totalorder %s1386_s19, 1 }
   0xe   : > { %p2084_p7 = por %p2498_p3, %p87_p2  ;;  %p2088_p8 = por %p134_p4, %p81_p0 }
   0xf   : > { %p2092_p9 = por %p140_p6, %p87_p2  ;;  %p1387_p10 = scmp.ge.s32.totalorder %s2003_s17, 1 }
  0x10   : > { %s2503_s23 = scalar_select %p2088_p8, 1, 0 }
  0x11   : > { %s2504_s24 = scalar_select %p2092_p9, 1, 0 }
  0x12   : > { %p147_p11 = scmp.lt.s32.totalorder %s2003_s17, 3  ;;  %s2005_s26 = smov [#allocation7]  }
  0x13   : > { %s175_s27 = sshll.u32 %s2005_s26, 4  ;;  %p1669_p0 = scmp.lt.s32.totalorder %s2003_s17, 2  ;;  %s176_s27 = int_to_ptr.vmem [resolvable:$true] %s175_s27 }
  0x14   : > { %p2098_p12 = pnand %p1387_p10, %p147_p11  ;;  %s2006_s30 = smov [#allocation2]  }
  0x15   : > { %p2114_p2 = pnand %p1669_p0, %p2078_p5  ;;  %s162_s4 = sshll.u32 %s2006_s30, 4  ;;  %s163_s4 = int_to_ptr.vmem [resolvable:$true] %s162_s4 }
  0x16   : > { %p1652_p1 = pneg %p2098_p12  ;;  %s1846_s5 = scalar_lea.vmem %s176_s27, 1024 }
  0x17   : > { %p1847_p10 = scmp.ne.s32.totalorder %s176_s27, %s1846_s5  ;;  %p1854_p13 = scmp.lt.s32.totalorder %s176_s27, %s176_s27 }
  0x18   : > { %p2108_p4 = pnand %p1652_p1, %p2498_p3  ;;  %p1855_p3 = scmp.lt.s32.totalorder %s1846_s5, %s1846_s5 }
  0x1a   : > { %p1837_p6 = pneg %p2108_p4  ;;  %p1856_p9 = por %p1855_p3, %p1854_p13 }
  0x1c   : > { %p1849_p11 = pnand %p1847_p10, %p1837_p6 }
  0x1e   : > { %p1850_p1 = pneg %p1849_p11 }
  0x20   : > { %p1857_p8 = pnand %p1856_p9, %p1850_p1 }
  0x22   : > { %1860 = shalt.err (!%p1857_p8)
}
  0x23   : > { %s2007_s6 = smov 64   ;;  %s2008_s7 = smov 4  }
  0x24   : > { %1658 = dma.hbm_to_vmem [thread:$0]  (!%p2108_p4), %s2496_s2, 1024, %s176_s27, [#allocation6], %s2007_s6, %s2007_s6, %s2008_s7  }
  0x25   : > { %s1872_s10 = scalar_lea.vmem %s163_s4, 128  ;;  %p1880_p11 = scmp.lt.s32.totalorder %s163_s4, %s163_s4 }
  0x26   : > { %p1873_p5 = scmp.ne.s32.totalorder %s163_s4, %s1872_s10  ;;  %p1881_p3 = scmp.lt.s32.totalorder %s1872_s10, %s1872_s10 }
  0x28   : > { %p1875_p0 = pnand %p1873_p5, %p1837_p6  ;;  %p1882_p9 = por %p1881_p3, %p1880_p11 }
  0x2a   : > { %p1876_p10 = pneg %p1875_p0 }
  0x2c   : > { %p1883_p8 = pnand %p1882_p9, %p1876_p10 }
  0x2e   : > { %1886 = shalt.err (!%p1883_p8)
}
  0x2f   : > { %s2508_s0 = sld [smem:[#allocation13_spill]]  ;;  %s189_s21 = sand.u32 1, %s2003_s17  }
  0x30   : > { %s39_s26 = sadd.s32 1, %s1999_s16  ;;  %s191_s27 = sand.u32 1, %s1991_s14  }
  0x31   : > { %p41_p13 = scmp.ge.s32.totalorder %s39_s26, 2  ;;  %s1637_s30 = smul.u32 384, %s191_s27 }
  0x32   : > { %s1638_s5 = smul.u32 6144, %s1999_s16  ;;  %s2009_s27 = smov [#allocation5]  }
  0x33   : > { %s2522_s26 = smov (%p41_p13, %s39_s26), 0  ;;  %s193_s11 = scalar_lea.vmem [#allocation5], %s1637_s30 }
  0x34   : > { %s200_s9 = scalar_lea.hbm %s2495_s1, %s1638_s5  ;;  %s71_s10 = ssub.s32 %s1999_s16, %s2522_s26 }
  0x35   : > { %1655 = dma.hbm_to_vmem [thread:$0]  (!%p2108_p4), %s2508_s0, 128, %s163_s4, [#allocation3], %s2007_s6, %s2007_s6, %s2008_s7  }
  0x36   : > { %s201_s19 = sshll.u32 %s193_s11, 4  ;;  %p72_p6 = scmp.eq.s32.totalorder %s71_s10, 0  ;;  %s202_s19 = int_to_ptr.vmem [resolvable:$true] %s201_s19 }
  0x37   : > { %s190_s6 = scalar_lea.sflag [#allocation6], %s189_s21  ;;  %p1889_p4 = pneg %p2114_p2 }
  0x38   : > { %s2150_s4 = scalar_select %p72_p6, %s1991_s14, %s74_s20  }
  0x39   : > { %s1900_s7 = scalar_lea.vmem %s202_s19, 6144  ;;  %s1905_s0 = sshll.u32 %s2009_s27, 4  ;;  %s1906_s0 = int_to_ptr.vmem [resolvable:$false] %s1905_s0 }
  0x3a   : > { %p1901_p1 = scmp.ne.s32.totalorder %s202_s19, %s1900_s7  ;;  %s1907_s28 = scalar_lea.vmem %s1906_s0, 12288 }
  0x3b   : > { %p1908_p10 = scmp.lt.s32.totalorder %s202_s19, %s1906_s0  ;;  %p1909_p11 = scmp.lt.s32.totalorder %s1907_s28, %s1900_s7 }
  0x3c   : > { %p1903_p5 = pnand %p1901_p1, %p1889_p4 }
  0x3d   : > { %p1910_p3 = por %p1909_p11, %p1908_p10 }
  0x3e   : > { %p1904_p0 = pneg %p1903_p5 }
  0x40   : > { %p1911_p9 = pnand %p1910_p3, %p1904_p0 }
  0x42   : > { %1914 = shalt.err (!%p1911_p9)
}
  0x43   : > { %s2010_s30 = smov 768   ;;  %s2011_s20 = smov 48  }
  0x44   : > { %1662 = dma.hbm_to_vmem [thread:$0]  (!%p2114_p2), %s200_s9, 6144, %s202_s19, %s190_s6, %s2010_s30, %s2010_s30, %s2011_s20  }
  0x45   : > { %213 = sbr.rel (%p2098_p12) target bundleno = 617 (0x269), region = 32  ;;  %p2509_p8 = scmp.eq.s32.totalorder (!%p2098_p12), %s2067_s18, 0 }
  0x4a   : > { %1966 = dma.done.wait (%p2509_p8), [#allocation3], 128   ;;  %p2510_p13 = pmov %p2509_p8 }
  0x4b   : > { %s219_s0 = sand.u32 1, %s2067_s18   ;;  %s2164_s21 = sand.u32 1, %s1987_s13  }
  0x4c   : > { %1968 = vsyncadd (%p2510_p13), [#allocation3], 4294967168  ;;  %s1639_s5 = smul.u32 384, %s2164_s21  ;;  %s220_s8 = scalar_lea.sflag [#allocation6], %s219_s0 }
  0x4e   : > { %s2167_s29 = scalar_lea.vmem [#allocation5], %s1639_s5 }
  0x4f   : > { %1970 = dma.done.wait (%p2084_p7), %s220_s8, 6144  }
  0x50   : > { %1972 = vsyncadd (%p2084_p7), %s220_s8, 4294961152  ;;  %p2511_p12 = pmov %p2509_p8 }
  0x51   : > { %p2512_p2 = pmov %p2509_p8 }
  0x52   : > { %1974 = dma.done.wait (%p2511_p12), [#allocation6], 1024  }
  0x53   : > { %1976 = vsyncadd (%p2512_p2), [#allocation6], 4294966272  ;;  %v2012_v0 = vmov 0   ;;  %v1730_v1 = vld [vmem:[%s2167_s29 + $0x124] ss:$48 sps:$4 sm:$0xff]   ;;  %v2197_v19 = vld [vmem:[#allocation2] sm:$0xff]  }
  0x54   : > { %631 = vmatprep.mubr.bf16.mxu1 %v2012_v0  ;;  %588 = vmatprep.mubr.bf16.mxu0 %v2012_v0  ;;  %v1732_v2 = vld [vmem:[%s2167_s29 + $0x12c] ss:$48 sps:$4 sm:$0xff]   ;;  %v1734_v3 = vld [vmem:[%s2167_s29 + $0x120] ss:$48 sps:$4 sm:$0xff]   ;;  %v1735_v4 = vld [vmem:[%s2167_s29 + $0x128] ss:$48 sps:$4 sm:$0xff]  }
  0x55   : > { %564 = vmatprep.subr.bf16.mxu0 %v1730_v1  ;;  %607 = vmatprep.subr.bf16.mxu1 %v1732_v2  ;;  %v1736_v5 = vld [vmem:[%s2167_s29 + $0xc4] ss:$48 sps:$4 sm:$0xff]   ;;  %v1738_v6 = vld [vmem:[%s2167_s29 + $0xcc] ss:$48 sps:$4 sm:$0xff]   ;;  %v1740_v7 = vld [vmem:[%s2167_s29 + $0xc0] ss:$48 sps:$4 sm:$0xff]  }
  0x56   : > { %565 = vmatpush1.bf16.msra.mxu0 %v1734_v3  ;;  %608 = vmatpush1.bf16.msra.mxu1 %v1735_v4  ;;  %v1741_v8 = vld [vmem:[%s2167_s29 + $0xc8] ss:$48 sps:$4 sm:$0xff]   ;;  %v1742_v9 = vld [vmem:[%s2167_s29 + $0x64] ss:$48 sps:$4 sm:$0xff]   ;;  %v1744_v10 = vld [vmem:[%s2167_s29 + $0x6c] ss:$48 sps:$4 sm:$0xff]  }
  0x57   : > { %566 = vmatprep.subr.bf16.mxu0 %v1736_v5  ;;  %609 = vmatprep.subr.bf16.mxu1 %v1738_v6  ;;  %v1746_v11 = vld [vmem:[%s2167_s29 + $0x60] ss:$48 sps:$4 sm:$0xff]   ;;  %v1747_v12 = vld [vmem:[%s2167_s29 + $0x68] ss:$48 sps:$4 sm:$0xff]   ;;  %v1748_v13 = vld [vmem:[%s2167_s29 + $0x4] ss:$48 sps:$4 sm:$0xff]  }
  0x58   : > { %v1750_v14 = vld [vmem:[%s2167_s29 + $0xc] ss:$48 sps:$4 sm:$0xff]   ;;  %v1752_v15 = vld [vmem:[%s2167_s29] ss:$48 sps:$4 sm:$0xff]   ;;  %v1753_v16 = vld [vmem:[%s2167_s29 + $0x8] ss:$48 sps:$4 sm:$0xff]  }
  0x59   : > { %v1757_v17 = vld [vmem:[%s2167_s29 + $0x134] ss:$48 sps:$4 sm:$0xff]   ;;  %v1760_v18 = vld [vmem:[%s2167_s29 + $0x13c] ss:$48 sps:$4 sm:$0xff]   ;;  %v1755_v20 = vld [vmem:[%s2167_s29 + $0x130] ss:$48 sps:$4 sm:$0xff]  }
  0x5a   : > { %567 = vmatpush1.bf16.msra.mxu0 %v1740_v7  ;;  %610 = vmatpush1.bf16.msra.mxu1 %v1741_v8  ;;  %vm552_vm0 = vcmask 523264   ;;  %v1758_v21 = vld [vmem:[%s2167_s29 + $0x138] ss:$48 sps:$4 sm:$0xff]   ;;  %v1763_v22 = vld [vmem:[%s2167_s29 + $0xd4] ss:$48 sps:$4 sm:$0xff]   ;;  %v2013_v51 = vmov 0.0  }
  0x5b   : > { %568 = vmatprep.subr.bf16.mxu0 %v1742_v9  ;;  %611 = vmatprep.subr.bf16.mxu1 %v1744_v10  ;;  %v1766_v23 = vld [vmem:[%s2167_s29 + $0xdc] ss:$48 sps:$4 sm:$0xff]   ;;  %v1761_v24 = vld [vmem:[%s2167_s29 + $0xd0] ss:$48 sps:$4 sm:$0xff]   ;;  %v1764_v25 = vld [vmem:[%s2167_s29 + $0xd8] ss:$48 sps:$4 sm:$0xff]  }
  0x5c   : > { %v1769_v26 = vld [vmem:[%s2167_s29 + $0x74] ss:$48 sps:$4 sm:$0xff]   ;;  %v1772_v27 = vld [vmem:[%s2167_s29 + $0x7c] ss:$48 sps:$4 sm:$0xff]   ;;  %v1767_v28 = vld [vmem:[%s2167_s29 + $0x70] ss:$48 sps:$4 sm:$0xff]  }
  0x5d   : > { %v1770_v29 = vld [vmem:[%s2167_s29 + $0x78] ss:$48 sps:$4 sm:$0xff]   ;;  %v1775_v30 = vld [vmem:[%s2167_s29 + $0x14] ss:$48 sps:$4 sm:$0xff]   ;;  %v1778_v31 = vld [vmem:[%s2167_s29 + $0x1c] ss:$48 sps:$4 sm:$0xff]  }
  0x5e   : > { %569 = vmatpush1.bf16.msra.mxu0 %v1746_v11  ;;  %612 = vmatpush1.bf16.msra.mxu1 %v1747_v12  ;;  %v1773_v32 = vld [vmem:[%s2167_s29 + $0x10] ss:$48 sps:$4 sm:$0xff]   ;;  %v1776_v33 = vld [vmem:[%s2167_s29 + $0x18] ss:$48 sps:$4 sm:$0xff]   ;;  %v1781_v34 = vld [vmem:[%s2167_s29 + $0x144] ss:$48 sps:$4 sm:$0xff]  }
  0x5f   : > { %570 = vmatprep.subr.bf16.mxu0 %v1748_v13  ;;  %613 = vmatprep.subr.bf16.mxu1 %v1750_v14  ;;  %v1784_v35 = vld [vmem:[%s2167_s29 + $0x14c] ss:$48 sps:$4 sm:$0xff]   ;;  %v1779_v36 = vld [vmem:[%s2167_s29 + $0x140] ss:$48 sps:$4 sm:$0xff]   ;;  %v1782_v37 = vld [vmem:[%s2167_s29 + $0x148] ss:$48 sps:$4 sm:$0xff]  }
  0x60   : > { %v1787_v38 = vld [vmem:[%s2167_s29 + $0xe4] ss:$48 sps:$4 sm:$0xff]   ;;  %v1790_v39 = vld [vmem:[%s2167_s29 + $0xec] ss:$48 sps:$4 sm:$0xff]   ;;  %v1785_v40 = vld [vmem:[%s2167_s29 + $0xe0] ss:$48 sps:$4 sm:$0xff]  }
  0x61   : > { %v1788_v41 = vld [vmem:[%s2167_s29 + $0xe8] ss:$48 sps:$4 sm:$0xff]   ;;  %v1793_v42 = vld [vmem:[%s2167_s29 + $0x84] ss:$48 sps:$4 sm:$0xff]   ;;  %v1796_v43 = vld [vmem:[%s2167_s29 + $0x8c] ss:$48 sps:$4 sm:$0xff]  }
  0x62   : > { %571 = vmatpush1.bf16.msra.mxu0 %v1752_v15  ;;  %614 = vmatpush1.bf16.msra.mxu1 %v1753_v16  ;;  %v1791_v44 = vld [vmem:[%s2167_s29 + $0x80] ss:$48 sps:$4 sm:$0xff]   ;;  %v1794_v45 = vld [vmem:[%s2167_s29 + $0x88] ss:$48 sps:$4 sm:$0xff]   ;;  %v1799_v46 = vld [vmem:[%s2167_s29 + $0x24] ss:$48 sps:$4 sm:$0xff]  }
  0x63   : > { %650 = vmatprep.subr.bf16.mxu0 %v1757_v17  ;;  %693 = vmatprep.subr.bf16.mxu1 %v1760_v18  ;;  %v1802_v47 = vld [vmem:[%s2167_s29 + $0x2c] ss:$48 sps:$4 sm:$0xff]   ;;  %v1797_v48 = vld [vmem:[%s2167_s29 + $0x20] ss:$48 sps:$4 sm:$0xff]   ;;  %v1800_v49 = vld [vmem:[%s2167_s29 + $0x28] ss:$48 sps:$4 sm:$0xff]  }
  0x64   : > { %v2245_v50 = vld [vmem:[#allocation7 + $0x38] sm:$0xff]   ;;  %v2253_v52 = vld [vmem:[#allocation7 + $0x30] sm:$0xff]   ;;  %v2259_v53 = vld [vmem:[#allocation7 + $0x28] sm:$0xff]   ;;  %vm2014_vm1 = vmmov 0   ;;  %s1395_s18 = sshll.u32 %s2164_s21, 3  ;;  %s1460_s22 = sshll.u32 %s1995_s15, 7 }
  0x65   : > { %1446 = vmatmul.mubr.msk.bf16.vlgmr.msra.gmra.mxu1 %vm552_vm0, %v2197_v19  ;;  %1445 = vmatmul.mubr.msk.bf16.vlgmr.msra.gmra.mxu0 %vm552_vm0, %v2197_v19  ;;  %v2265_v54 = vld [vmem:[#allocation7 + $0x20] sm:$0xff]   ;;  %v2269_v55 = vld [vmem:[#allocation7 + $0x18] sm:$0xff]   ;;  %v2277_v56 = vld [vmem:[#allocation7 + $0x10] sm:$0xff]   ;;  %s249_s25 = scalar_lea.vmem [#allocation8], %s1395_s18  ;;  %s2452_s19 = scalar_lea.hbm %s2497_s3, %s1460_s22 }
  0x66   : > { %651 = vmatpush1.bf16.msra.mxu0 %v1755_v20  ;;  %694 = vmatpush1.bf16.msra.mxu1 %v1758_v21  ;;  %v2283_v57 = vld [vmem:[#allocation7 + $0x8] sm:$0xff]   ;;  %v2289_v58 = vld [vmem:[#allocation7] sm:$0xff]   ;;  %s1279_s9 = sshll.u32 %s249_s25, 4  ;;  %s1265_s6 = scalar_lea.sflag [#allocation4], %s2164_s21  ;;  %s1280_s9 = int_to_ptr.vmem [resolvable:$true] %s1279_s9 }
  0x67   : > { %652 = vmatprep.subr.bf16.mxu0 %v1763_v22  ;;  %695 = vmatprep.subr.bf16.mxu1 %v1766_v23  ;;  %s1915_s7 = scalar_lea.vmem %s1280_s9, 128  ;;  %p2513_p6 = scmp.ne.s32.totalorder %s2503_s23, 0 }
  0x68   : > { %717 = vmatprep.mubr.bf16.mxu1 %v2012_v0  ;;  %674 = vmatprep.mubr.bf16.mxu0 %v2012_v0  ;;  %p1916_p7 = scmp.ne.s32.totalorder %s1280_s9, %s1915_s7  ;;  %s2015_s15 = smov [#allocation8]  }
  0x69   : > { %s1919_s27 = sshll.u32 %s2015_s15, 4  ;;  %s1920_s27 = int_to_ptr.vmem [resolvable:$false] %s1919_s27 }
  0x6a   : > { %653 = vmatpush1.bf16.msra.mxu0 %v1761_v24  ;;  %696 = vmatpush1.bf16.msra.mxu1 %v1764_v25  ;;  %p1917_p4 = pnand %p1916_p7, %p2513_p6  ;;  %s1921_s28 = scalar_lea.vmem %s1920_s27, 256 }
  0x6b   : > { %654 = vmatprep.subr.bf16.mxu0 %v1769_v26  ;;  %697 = vmatprep.subr.bf16.mxu1 %v1772_v27  ;;  %p1922_p5 = scmp.lt.s32.totalorder %s1280_s9, %s1920_s27  ;;  %p1923_p0 = scmp.lt.s32.totalorder %s1921_s28, %s1915_s7 }
  0x6c   : > { %p1918_p1 = pneg %p1917_p4 }
  0x6d   : > { %p1924_p10 = por %p1923_p0, %p1922_p5 }
  0x6e   : > { %655 = vmatpush1.bf16.msra.mxu0 %v1767_v28  ;;  %698 = vmatpush1.bf16.msra.mxu1 %v1770_v29 }
  0x6f   : > { %656 = vmatprep.subr.bf16.mxu0 %v1775_v30  ;;  %699 = vmatprep.subr.bf16.mxu1 %v1778_v31  ;;  %p1925_p11 = pnand %p1924_p10, %p1918_p1 }
  0x72   : > { %657 = vmatpush1.bf16.msra.mxu0 %v1773_v32  ;;  %700 = vmatpush1.bf16.msra.mxu1 %v1776_v33 }
  0x73   : > { %736 = vmatprep.subr.bf16.mxu0 %v1781_v34  ;;  %779 = vmatprep.subr.bf16.mxu1 %v1784_v35 }
  0x75   : > { %1448 = vmatmul.mubr.msk.bf16.vlgmr.msra.gmra.mxu1 %vm552_vm0, %v2197_v19  ;;  %1447 = vmatmul.mubr.msk.bf16.vlgmr.msra.gmra.mxu0 %vm552_vm0, %v2197_v19 }
  0x76   : > { %737 = vmatpush1.bf16.msra.mxu0 %v1779_v36  ;;  %780 = vmatpush1.bf16.msra.mxu1 %v1782_v37 }
  0x77   : > { %738 = vmatprep.subr.bf16.mxu0 %v1787_v38  ;;  %781 = vmatprep.subr.bf16.mxu1 %v1790_v39 }
  0x78   : > { %760 = vmatprep.mubr.bf16.mxu0 %v2012_v0  ;;  %803 = vmatprep.mubr.bf16.mxu1 %v2012_v0 }
  0x7a   : > { %739 = vmatpush1.bf16.msra.mxu0 %v1785_v40  ;;  %782 = vmatpush1.bf16.msra.mxu1 %v1788_v41 }
  0x7b   : > { %740 = vmatprep.subr.bf16.mxu0 %v1793_v42  ;;  %783 = vmatprep.subr.bf16.mxu1 %v1796_v43 }
  0x7e   : > { %741 = vmatpush1.bf16.msra.mxu0 %v1791_v44  ;;  %784 = vmatpush1.bf16.msra.mxu1 %v1794_v45 }
  0x7f   : > { %742 = vmatprep.subr.bf16.mxu0 %v1799_v46  ;;  %785 = vmatprep.subr.bf16.mxu1 %v1802_v47 }
  0x82   : > { %743 = vmatpush1.bf16.msra.mxu0 %v1797_v48  ;;  %786 = vmatpush1.bf16.msra.mxu1 %v1800_v49 }
  0x83   : > { %1517 = vmatprep.subr.bf16.mxu0 %v2013_v51  ;;  %1537 = vmatprep.subr.bf16.mxu1 %v2013_v51 }
  0x85   : > { %1449 = vmatmul.mubr.msk.bf16.vlgmr.msra.gmra.mxu0 %vm552_vm0, %v2197_v19  ;;  %1450 = vmatmul.mubr.msk.bf16.vlgmr.msra.gmra.mxu1 %vm552_vm0, %v2197_v19 }
  0x86   : > { %1518 = vmatpush3.bf16.msra.mxu0 %v2245_v50  ;;  %1538 = vmatpush3.bf16.msra.mxu1 %v2245_v50 }
  0x87   : > { %1519 = vmatprep.subr.bf16.mxu0 %v2013_v51  ;;  %1539 = vmatprep.subr.bf16.mxu1 %v2013_v51 }
  0x88   : > { %1533 = vmatprep.mubr.msk.bf16.mxu0 %vm2014_vm1, %v2013_v51  ;;  %1553 = vmatprep.mubr.msk.bf16.mxu1 %vm2014_vm1, %v2013_v51 }
  0x8a   : > { %1520 = vmatpush3.bf16.msra.mxu0 %v2253_v52  ;;  %1540 = vmatpush3.bf16.msra.mxu1 %v2253_v52 }
  0x8b   : > { %1521 = vmatprep.subr.bf16.mxu0 %v2013_v51  ;;  %1541 = vmatprep.subr.bf16.mxu1 %v2013_v51 }
  0x8e   : > { %1522 = vmatpush3.bf16.msra.mxu0 %v2259_v53  ;;  %1542 = vmatpush3.bf16.msra.mxu1 %v2259_v53 }
  0x8f   : > { %1523 = vmatprep.subr.bf16.mxu0 %v2013_v51  ;;  %1543 = vmatprep.subr.bf16.mxu1 %v2013_v51 }
  0x92   : > { %1524 = vmatpush3.bf16.msra.mxu0 %v2265_v54  ;;  %1544 = vmatpush3.bf16.msra.mxu1 %v2265_v54 }
  0x93   : > { %1525 = vmatprep.subr.bf16.mxu0 %v2013_v51  ;;  %1545 = vmatprep.subr.bf16.mxu1 %v2013_v51 }
  0x96   : > { %1526 = vmatpush3.bf16.msra.mxu0 %v2269_v55  ;;  %1546 = vmatpush3.bf16.msra.mxu1 %v2269_v55 }
  0x97   : > { %1527 = vmatprep.subr.bf16.mxu0 %v2013_v51  ;;  %1547 = vmatprep.subr.bf16.mxu1 %v2013_v51 }
  0x9a   : > { %1528 = vmatpush3.bf16.msra.mxu0 %v2277_v56  ;;  %1548 = vmatpush3.bf16.msra.mxu1 %v2277_v56 }
  0x9b   : > { %1529 = vmatprep.subr.bf16.mxu0 %v2013_v51  ;;  %1549 = vmatprep.subr.bf16.mxu1 %v2013_v51 }
  0x9e   : > { %1530 = vmatpush3.bf16.msra.mxu0 %v2283_v57  ;;  %1550 = vmatpush3.bf16.msra.mxu1 %v2283_v57 }
  0x9f   : > { %1531 = vmatprep.subr.bf16.mxu0 %v2013_v51  ;;  %1551 = vmatprep.subr.bf16.mxu1 %v2013_v51 }
  0xa2   : > { %1532 = vmatpush3.bf16.msra.mxu0 %v2289_v58  ;;  %1552 = vmatpush3.bf16.msra.mxu1 %v2289_v58 }
  0xa3   : > { %1557 = vmatprep.subr.bf16.mxu0 %v2013_v51  ;;  %1577 = vmatprep.subr.bf16.mxu1 %v2013_v51 }
 0x125   : > { %v633_v59 = vpop.f32.mrf.mxu1  ;;  %v590_v60 = vpop.f32.mrf.mxu0 }
 0x126   : > { %v814_v3 = vmul.f32 %v590_v60, %v590_v60  ;;  %v816_v29 = vmul.f32 %v633_v59, %v633_v59 }
 0x127   : > { %v2299_v61 = vpop.f32.mrf.mxu1  ;;  %v592_v62 = vpop.f32.mrf.mxu0 }
 0x128   : > { %v815_v8 = vmul.f32 %v592_v62, %v592_v62 }
 0x129   : > { %v637_v63 = vpop.f32.mrf.mxu1  ;;  %v594_v0 = vpop.f32.mrf.mxu0 }
 0x12a   : > { %v820_v13 = vmul.f32 %v594_v0, %v594_v0  ;;  %v822_v30 = vmul.f32 %v637_v63, %v637_v63 }
 0x12b   : > { %v639_v1 = vpop.f32.mrf.mxu1  ;;  %v596_v2 = vpop.f32.mrf.mxu0 }
 0x12c   : > { %v821_v17 = vmul.f32 %v596_v2, %v596_v2  ;;  %v823_v32 = vmul.f32 %v639_v1, %v639_v1 }
 0x135   : > { %v719_v4 = vpop.f32.mrf.mxu1  ;;  %v2301_v5 = vpop.f32.mrf.mxu0 }
 0x136   : > { %v826_v6 = vmul.f32 %v719_v4, %v719_v4 }
 0x137   : > { %v721_v7 = vpop.f32.mrf.mxu1  ;;  %v2303_v12 = vpop.f32.mrf.mxu0 }
 0x138   : > { %v838_v9 = vadd.f32 %v826_v6, %v814_v3  ;;  %v827_v10 = vmul.f32 %v721_v7, %v721_v7  ;;  %v817_v3 = vmul.f32 %v2299_v61, %v2299_v61 }
 0x139   : > { %v723_v11 = vpop.f32.mrf.mxu1  ;;  %v2305_v20 = vpop.f32.mrf.mxu0 }
 0x13a   : > { %1811 = vrsqrt.f32 %v838_v9  ;;  %v839_v14 = vadd.f32 %v827_v10, %v815_v8  ;;  %v832_v15 = vmul.f32 %v723_v11, %v723_v11  ;;  %vm852_vm2 = vcmp.eq.f32.partialorder %v838_v9, inf }
 0x13b   : > { %v725_v16 = vpop.f32.mrf.mxu1  ;;  %v2307_v22 = vpop.f32.mrf.mxu0  ;;  %vm854_vm3 = vcmp.eq.f32.partialorder %v838_v9, 0.0  ;;  %v855_v35 = vand.u32 2147483648, %v838_v9 }
 0x13c   : > { %1813 = vrsqrt.f32 %v839_v14  ;;  %v844_v18 = vadd.f32 %v832_v15, %v820_v13  ;;  %v833_v19 = vmul.f32 %v725_v16, %v725_v16  ;;  %vm859_vm4 = vcmp.eq.f32.partialorder %v839_v14, inf }
 0x13d   : > { %vm861_vm5 = vcmp.eq.f32.partialorder %v839_v14, 0.0  ;;  %v862_v36 = vand.u32 2147483648, %v839_v14 }
 0x13e   : > { %1815 = vrsqrt.f32 %v844_v18  ;;  %v845_v21 = vadd.f32 %v833_v19, %v821_v17  ;;  %vm894_vm6 = vcmp.eq.f32.partialorder %v844_v18, inf  ;;  %vm896_vm7 = vcmp.eq.f32.partialorder %v844_v18, 0.0 }
 0x13f   : > { %v897_v42 = vand.u32 2147483648, %v844_v18 }
 0x140   : > { %1817 = vrsqrt.f32 %v845_v21  ;;  %vm901_vm8 = vcmp.eq.f32.partialorder %v845_v21, inf  ;;  %vm903_vm9 = vcmp.eq.f32.partialorder %v845_v21, 0.0  ;;  %v904_v49 = vand.u32 2147483648, %v845_v21 }
 0x145   : > { %v762_v23 = vpop.f32.mrf.mxu0  ;;  %v805_v61 = vpop.f32.mrf.mxu1 }
 0x146   : > { %v828_v41 = vmul.f32 %v762_v23, %v762_v23 }
 0x147   : > { %v1812_v24 = vpop.eup %1811  ;;  %v764_v25 = vpop.f32.mrf.mxu0 }
 0x148   : > { %v851_v28 = vmul.f32 %v1812_v24, %v838_v9  ;;  %v829_v59 = vmul.f32 %v764_v25, %v764_v25  ;;  %v2312_v0 = vadd.f32 %v828_v41, %v816_v29  ;;  %v818_v25 = vmul.f32 %v2301_v5, %v2301_v5 }
 0x149   : > { %v1814_v26 = vpop.eup %1813  ;;  %v766_v27 = vpop.f32.mrf.mxu0 }
 0x14a   : > { %v858_v33 = vmul.f32 %v1814_v26, %v839_v14  ;;  %v834_v38 = vmul.f32 %v766_v27, %v766_v27  ;;  %v853_v39 = vsel %vm852_vm2, %v838_v9, %v851_v28  ;;  %v2319_v8 = vadd.f32 %v829_v59, %v817_v3 }
 0x14b   : > { %v1816_v31 = vpop.eup %1815  ;;  %v768_v34 = vpop.f32.mrf.mxu0  ;;  %v856_v47 = vsel %vm854_vm3, %v855_v35, %v853_v39  ;;  %vm866_vm11 = vcmp.eq.f32.partialorder %v2312_v0, inf  ;;  %v869_v29 = vand.u32 2147483648, %v2312_v0  ;;  %vm868_vm15 = vcmp.eq.f32.partialorder %v2312_v0, 0.0 }
 0x14c   : > { %v893_v40 = vmul.f32 %v1816_v31, %v844_v18  ;;  %v835_v43 = vmul.f32 %v768_v34, %v768_v34  ;;  %v860_v45 = vsel %vm859_vm4, %v839_v14, %v858_v33  ;;  %v2310_v60 = vadd.f32 %v834_v38, %v822_v30  ;;  %v807_v14 = vpop.f32.mrf.mxu1 }
 0x14d   : > { %v1818_v37 = vpop.eup %1817  ;;  %v863_v1 = vsel %vm861_vm5, %v862_v36, %v860_v45  ;;  %vm873_vm14 = vcmp.eq.f32.partialorder %v2319_v8, inf  ;;  %v830_v33 = vmul.f32 %v805_v61, %v805_v61  ;;  %v876_v35 = vand.u32 2147483648, %v2319_v8 }
 0x14e   : > { %v895_v44 = vsel %vm894_vm6, %v844_v18, %v893_v40  ;;  %v900_v46 = vmul.f32 %v1818_v37, %v845_v21  ;;  %v2317_v4 = vadd.f32 %v835_v43, %v823_v32  ;;  %1819 = vrsqrt.f32 %v2310_v60  ;;  %v809_v19 = vpop.f32.mrf.mxu1 }
 0x14f   : > { %v898_v48 = vsel %vm896_vm7, %v897_v42, %v895_v44  ;;  %1821 = vrsqrt.f32 %v2312_v0  ;;  %vm908_vm10 = vcmp.eq.f32.partialorder %v2310_v60, inf  ;;  %v911_v24 = vand.u32 2147483648, %v2310_v60 }
 0x150   : > { %v934_v62 = vsub.f32 %v856_v47, %v898_v48  ;;  %v902_v63 = vsel %vm901_vm8, %v845_v21, %v900_v46  ;;  %1823 = vrsqrt.f32 %v2317_v4  ;;  %vm915_vm12 = vcmp.eq.f32.partialorder %v2317_v4, inf  ;;  %v811_v28 = vpop.f32.mrf.mxu1 }
 0x151   : > { %v905_v2 = vsel %vm903_vm9, %v904_v49, %v902_v63  ;;  %1825 = vrsqrt.f32 %v2319_v8  ;;  %vm910_vm13 = vcmp.eq.f32.partialorder %v2310_v60, 0.0  ;;  %v918_v31 = vand.u32 2147483648, %v2317_v4 }
 0x152   : > { %v940_v6 = vpack.c.bf16 %v934_v62, %v934_v62  ;;  %v935_v7 = vsub.f32 %v863_v1, %v905_v2  ;;  %v836_v32 = vmul.f32 %v809_v19, %v809_v19  ;;  %vm917_vm0 = vcmp.eq.f32.partialorder %v2317_v4, 0.0 }
 0x153   : > { %v824_v37 = vmul.f32 %v2305_v20, %v2305_v20  ;;  %v837_v38 = vmul.f32 %v811_v28, %v811_v28  ;;  %vm875_vm2 = vcmp.eq.f32.partialorder %v2319_v8, 0.0  ;;  %v819_v40 = vmul.f32 %v2303_v12, %v2303_v12 }
 0x154   : > { %1534 = vmatmul.mubr.bf16.vlgmr.msra.gmra.mxu0 %v940_v6  ;;  %v941_v9 = vpack.c.bf16 %v935_v7, %v935_v7  ;;  %v825_v42 = vmul.f32 %v2307_v22, %v2307_v22  ;;  %v831_v43 = vmul.f32 %v807_v14, %v807_v14  ;;  %v2385_v45 = vadd.f32 %v830_v33, %v818_v25 }
 0x155   : > { %1558 = vmatpush3.bf16.msra.mxu0 %v2245_v50  ;;  %1573 = vmatprep.mubr.msk.bf16.mxu0 %vm2014_vm1, %v2013_v51  ;;  %v848_v44 = vadd.f32 %v836_v32, %v824_v37 }
 0x156   : > { %1554 = vmatmul.mubr.bf16.vlgmr.msra.gmra.mxu1 %v941_v9  ;;  %1559 = vmatprep.subr.bf16.mxu0 %v2013_v51  ;;  %v2388_v46 = vadd.f32 %v837_v38, %v825_v42  ;;  %v2392_v12 = vadd.f32 %v831_v43, %v819_v40  ;;  %vm880_vm3 = vcmp.eq.f32.partialorder %v2385_v45, inf  ;;  %v883_v1 = vand.u32 2147483648, %v2385_v45 }
 0x157   : > { %1578 = vmatpush3.bf16.msra.mxu1 %v2245_v50  ;;  %1593 = vmatprep.mubr.msk.bf16.mxu1 %vm2014_vm1, %v2013_v51  ;;  %1827 = vrsqrt.f32 %v848_v44  ;;  %v925_v63 = vand.u32 2147483648, %v848_v44  ;;  %vm924_vm5 = vcmp.eq.f32.partialorder %v848_v44, 0.0  ;;  %vm882_vm7 = vcmp.eq.f32.partialorder %v2385_v45, 0.0 }
 0x158   : > { %1579 = vmatprep.subr.bf16.mxu1 %v2013_v51  ;;  %1829 = vrsqrt.f32 %v2385_v45  ;;  %vm929_vm4 = vcmp.eq.f32.partialorder %v2388_v46, inf  ;;  %vm887_vm6 = vcmp.eq.f32.partialorder %v2392_v12, inf  ;;  %v932_v3 = vand.u32 2147483648, %v2388_v46 }
 0x159   : > { %1560 = vmatpush3.bf16.msra.mxu0 %v2253_v52  ;;  %1831 = vrsqrt.f32 %v2388_v46  ;;  %vm931_vm8 = vcmp.eq.f32.partialorder %v2388_v46, 0.0  ;;  %vm889_vm9 = vcmp.eq.f32.partialorder %v2392_v12, 0.0 }
 0x15a   : > { %1561 = vmatprep.subr.bf16.mxu0 %v2013_v51  ;;  %1833 = vrsqrt.f32 %v2392_v12 }
 0x15b   : > { %1580 = vmatpush3.bf16.msra.mxu1 %v2253_v52  ;;  %v1820_v10 = vpop.eup %1819 }
 0x15c   : > { %1581 = vmatprep.subr.bf16.mxu1 %v2013_v51  ;;  %v1822_v11 = vpop.eup %1821  ;;  %v907_v15 = vmul.f32 %v1820_v10, %v2310_v60 }
 0x15d   : > { %1562 = vmatpush3.bf16.msra.mxu0 %v2259_v53  ;;  %v1824_v13 = vpop.eup %1823  ;;  %v865_v17 = vmul.f32 %v1822_v11, %v2312_v0 }
 0x15e   : > { %1563 = vmatprep.subr.bf16.mxu0 %v2013_v51  ;;  %v1826_v16 = vpop.eup %1825  ;;  %v914_v18 = vmul.f32 %v1824_v13, %v2317_v4  ;;  %v909_v21 = vsel %vm908_vm10, %v2310_v60, %v907_v15 }
 0x15f   : > { %1582 = vmatpush3.bf16.msra.mxu1 %v2259_v53  ;;  %v872_v23 = vmul.f32 %v1826_v16, %v2319_v8  ;;  %v867_v26 = vsel %vm866_vm11, %v2312_v0, %v865_v17  ;;  %v912_v30 = vsel %vm910_vm13, %v911_v24, %v909_v21 }
 0x160   : > { %1583 = vmatprep.subr.bf16.mxu1 %v2013_v51  ;;  %v916_v27 = vsel %vm915_vm12, %v2317_v4, %v914_v18  ;;  %v870_v34 = vsel %vm868_vm15, %v869_v29, %v867_v26 }
 0x161   : > { %1564 = vmatpush3.bf16.msra.mxu0 %v2265_v54  ;;  %v874_v5 = vsel %vm873_vm14, %v2319_v8, %v872_v23  ;;  %v919_v36 = vsel %vm917_vm0, %v918_v31, %v916_v27  ;;  %v936_v39 = vsub.f32 %v870_v34, %v912_v30 }
 0x162   : > { %1565 = vmatprep.subr.bf16.mxu0 %v2013_v51  ;;  %v877_v41 = vsel %vm875_vm2, %v876_v35, %v874_v5 }
 0x163   : > { %1584 = vmatpush3.bf16.msra.mxu1 %v2265_v54  ;;  %v937_v20 = vsub.f32 %v877_v41, %v919_v36  ;;  %v942_v47 = vpack.c.bf16 %v936_v39, %v936_v39 }
 0x164   : > { %1585 = vmatprep.subr.bf16.mxu1 %v2013_v51 }
 0x165   : > { %1566 = vmatpush3.bf16.msra.mxu0 %v2269_v55  ;;  %v943_v22 = vpack.c.bf16 %v937_v20, %v937_v20 }
 0x166   : > { %1567 = vmatprep.subr.bf16.mxu0 %v2013_v51 }
 0x167   : > { %1586 = vmatpush3.bf16.msra.mxu1 %v2269_v55 }
 0x168   : > { %1587 = vmatprep.subr.bf16.mxu1 %v2013_v51 }
 0x169   : > { %1568 = vmatpush3.bf16.msra.mxu0 %v2277_v56 }
 0x16a   : > { %1569 = vmatprep.subr.bf16.mxu0 %v2013_v51 }
 0x16b   : > { %1588 = vmatpush3.bf16.msra.mxu1 %v2277_v56 }
 0x16c   : > { %1589 = vmatprep.subr.bf16.mxu1 %v2013_v51 }
 0x16d   : > { %1570 = vmatpush3.bf16.msra.mxu0 %v2283_v57 }
 0x16e   : > { %1571 = vmatprep.subr.bf16.mxu0 %v2013_v51 }
 0x16f   : > { %1590 = vmatpush3.bf16.msra.mxu1 %v2283_v57 }
 0x170   : > { %1591 = vmatprep.subr.bf16.mxu1 %v2013_v51 }
 0x171   : > { %1572 = vmatpush3.bf16.msra.mxu0 %v2289_v58 }
 0x172   : > { %1597 = vmatprep.subr.bf16.mxu0 %v2013_v51 }
 0x173   : > { %1592 = vmatpush3.bf16.msra.mxu1 %v2289_v58 }
 0x174   : > { %1574 = vmatmul.mubr.bf16.vlgmr.msra.gmra.mxu0 %v942_v47  ;;  %1617 = vmatprep.subr.bf16.mxu1 %v2013_v51 }
 0x175   : > { %1598 = vmatpush3.bf16.msra.mxu0 %v2245_v50  ;;  %1613 = vmatprep.mubr.msk.bf16.mxu0 %vm2014_vm1, %v2013_v51 }
 0x176   : > { %1594 = vmatmul.mubr.bf16.vlgmr.msra.gmra.mxu1 %v943_v22  ;;  %1599 = vmatprep.subr.bf16.mxu0 %v2013_v51 }
 0x177   : > { %1618 = vmatpush3.bf16.msra.mxu1 %v2245_v50  ;;  %1633 = vmatprep.mubr.msk.bf16.mxu1 %vm2014_vm1, %v2013_v51  ;;  %v1828_v50 = vpop.eup %1827  ;;  %vm922_vm1 = vcmp.eq.f32.partialorder %v848_v44, inf }
 0x178   : > { %1619 = vmatprep.subr.bf16.mxu1 %v2013_v51  ;;  %v1830_v48 = vpop.eup %1829 }
 0x179   : > { %1600 = vmatpush3.bf16.msra.mxu0 %v2253_v52  ;;  %v1832_v49 = vpop.eup %1831 }
 0x17a   : > { %1601 = vmatprep.subr.bf16.mxu0 %v2013_v51  ;;  %v1834_v59 = vpop.eup %1833  ;;  %v928_v60 = vmul.f32 %v1832_v49, %v2388_v46 }
 0x17b   : > { %1620 = vmatpush3.bf16.msra.mxu1 %v2253_v52  ;;  %v921_v52 = vmul.f32 %v1828_v50, %v848_v44 }
 0x17c   : > { %1621 = vmatprep.subr.bf16.mxu1 %v2013_v51 }
 0x17d   : > { %1602 = vmatpush3.bf16.msra.mxu0 %v2259_v53  ;;  %v923_v62 = vsel %vm922_vm1, %v848_v44, %v921_v52 }
 0x17e   : > { %1603 = vmatprep.subr.bf16.mxu0 %v2013_v51  ;;  %v926_v2 = vsel %vm924_vm5, %v925_v63, %v923_v62 }
 0x17f   : > { %1622 = vmatpush3.bf16.msra.mxu1 %v2259_v53  ;;  %v879_v53 = vmul.f32 %v1830_v48, %v2385_v45 }
 0x180   : > { %1623 = vmatprep.subr.bf16.mxu1 %v2013_v51 }
 0x181   : > { %1604 = vmatpush3.bf16.msra.mxu0 %v2265_v54  ;;  %v881_v0 = vsel %vm880_vm3, %v2385_v45, %v879_v53 }
 0x182   : > { %1605 = vmatprep.subr.bf16.mxu0 %v2013_v51  ;;  %v884_v6 = vsel %vm882_vm7, %v883_v1, %v881_v0 }
 0x183   : > { %1624 = vmatpush3.bf16.msra.mxu1 %v2265_v54  ;;  %v886_v54 = vmul.f32 %v1834_v59, %v2392_v12  ;;  %v938_v8 = vsub.f32 %v884_v6, %v926_v2 }
 0x184   : > { %1625 = vmatprep.subr.bf16.mxu1 %v2013_v51 }
 0x185   : > { %1606 = vmatpush3.bf16.msra.mxu0 %v2269_v55  ;;  %v888_v4 = vsel %vm887_vm6, %v2392_v12, %v886_v54  ;;  %v944_v10 = vpack.c.bf16 %v938_v8, %v938_v8 }
 0x186   : > { %1607 = vmatprep.subr.bf16.mxu0 %v2013_v51 }
 0x187   : > { %1626 = vmatpush3.bf16.msra.mxu1 %v2269_v55  ;;  %v930_v55 = vsel %vm929_vm4, %v2388_v46, %v928_v60 }
 0x188   : > { %1627 = vmatprep.subr.bf16.mxu1 %v2013_v51  ;;  %v933_v7 = vsel %vm931_vm8, %v932_v3, %v930_v55 }
 0x189   : > { %1608 = vmatpush3.bf16.msra.mxu0 %v2277_v56 }
 0x18a   : > { %1609 = vmatprep.subr.bf16.mxu0 %v2013_v51 }
 0x18b   : > { %1628 = vmatpush3.bf16.msra.mxu1 %v2277_v56  ;;  %v890_v56 = vand.u32 2147483648, %v2392_v12 }
 0x18c   : > { %1629 = vmatprep.subr.bf16.mxu1 %v2013_v51 }
 0x18d   : > { %1610 = vmatpush3.bf16.msra.mxu0 %v2283_v57  ;;  %v891_v9 = vsel %vm889_vm9, %v890_v56, %v888_v4 }
 0x18e   : > { %1611 = vmatprep.subr.bf16.mxu0 %v2013_v51  ;;  %v939_v61 = vsub.f32 %v891_v9, %v933_v7 }
 0x18f   : > { %1630 = vmatpush3.bf16.msra.mxu1 %v2283_v57 }
 0x190   : > { %1631 = vmatprep.subr.bf16.mxu1 %v2013_v51  ;;  %v945_v11 = vpack.c.bf16 %v939_v61, %v939_v61 }
 0x191   : > { %1612 = vmatpush3.bf16.msra.mxu0 %v2289_v58 }
 0x193   : > { %1632 = vmatpush3.bf16.msra.mxu1 %v2289_v58 }
 0x194   : > { %1614 = vmatmul.mubr.bf16.vlgmr.msra.gmra.mxu0 %v944_v10 }
 0x196   : > { %1634 = vmatmul.mubr.bf16.vlgmr.msra.gmra.mxu1 %v945_v11 }
 0x214   : > { %v1044_v13 = vpop.f32.mrf.mxu0 }
 0x215   : > { %v1050_v29 = vmul.f32 %v1044_v13, %v1044_v13 }
 0x216   : > { %v1535_v14 = vpop.f32.mrf.mxu0  ;;  %v1085_v15 = vpop.f32.mrf.mxu1 }
 0x217   : > { %v1091_v28 = vmul.f32 %v1085_v15, %v1085_v15 }
 0x218   : > { %v1047_v16 = vpop.f32.mrf.mxu0  ;;  %v1555_v17 = vpop.f32.mrf.mxu1 }
 0x219   : > { %v1092_v31 = vadd.f32 %v1091_v28, %v1050_v29 }
 0x21a   : > { %v1536_v18 = vpop.f32.mrf.mxu0  ;;  %v1088_v19 = vpop.f32.mrf.mxu1 }
 0x21c   : > { %v1556_v57 = vpop.f32.mrf.mxu1 }
 0x234   : > { %v1127_v21 = vpop.f32.mrf.mxu0 }
 0x235   : > { %v1133_v30 = vmul.f32 %v1127_v21, %v1127_v21 }
 0x236   : > { %v1575_v51 = vpop.f32.mrf.mxu0  ;;  %v1169_v23 = vpop.f32.mrf.mxu1 }
 0x237   : > { %v1134_v32 = vadd.f32 %v1133_v30, %v1092_v31  ;;  %v1175_v5 = vmul.f32 %v1169_v23, %v1169_v23 }
 0x238   : > { %v1130_v24 = vpop.f32.mrf.mxu0  ;;  %v1595_v25 = vpop.f32.mrf.mxu1 }
 0x239   : > { %v1176_v34 = vadd.f32 %v1175_v5, %v1134_v32 }
 0x23a   : > { %v1576_v26 = vpop.f32.mrf.mxu0  ;;  %v1172_v27 = vpop.f32.mrf.mxu1 }
 0x23c   : > { %v1596_v58 = vpop.f32.mrf.mxu1 }
 0x254   : > { %v1211_v33 = vpop.f32.mrf.mxu0 }
 0x255   : > { %v1217_v35 = vmul.f32 %v1211_v33, %v1211_v33 }
 0x256   : > { %v1615_v36 = vpop.f32.mrf.mxu0  ;;  %v1253_v37 = vpop.f32.mrf.mxu1 }
 0x257   : > { %v1218_v38 = vadd.f32 %v1217_v35, %v1176_v34  ;;  %v1259_v39 = vmul.f32 %v1253_v37, %v1253_v37 }
 0x258   : > { %v1214_v40 = vpop.f32.mrf.mxu0  ;;  %v1635_v41 = vpop.f32.mrf.mxu1 }
 0x259   : > { %v1260_v42 = vadd.f32 %v1259_v39, %v1218_v38 }
 0x25a   : > { %v1616_v43 = vpop.f32.mrf.mxu0  ;;  %v1256_v44 = vpop.f32.mrf.mxu1 }
 0x25b   : > { %1263 = vst [vmem:[%s249_s25] sm:$0xff] %v1260_v42 }
 0x25c   : > { %v1636_v20 = vpop.f32.mrf.mxu1 }
 0x25d   : > { %1928 = shalt.err (!%p1925_p11)
}
 0x25e   : > { %s1929_s30 = scalar_lea.hbm %s2452_s19, 128  ;;  %s1933_s21 = scalar_lea.hbm %s2497_s3, 256 }
 0x25f   : > { %p1930_p3 = scmp.ne.s32.totalorder %s2452_s19, %s1929_s30  ;;  %p1934_p13 = scmp.lt.s32.totalorder %s2452_s19, %s2497_s3 }
 0x260   : > { %p1935_p12 = scmp.lt.s32.totalorder %s1933_s21, %s1929_s30 }
 0x261   : > { %p1931_p9 = pnand %p1930_p3, %p2513_p6 }
 0x262   : > { %p1936_p2 = por %p1935_p12, %p1934_p13 }
 0x263   : > { %p1932_p8 = pneg %p1931_p9 }
 0x265   : > { %p1937_p7 = pnand %p1936_p2, %p1932_p8 }
 0x267   : > { %1940 = shalt.err (!%p1937_p7)
}
 0x268   : > { %1650 = dma.vmem_to_hbm [thread:$0]  (%p2513_p6), %s1280_s9, 128, %s2452_s19, %s1265_s6  }
 0x269 PF: > { %s1291_s29 = sand.u32 1, %s1983_s12   ;;  %p2514_p4 = scmp.ne.s32.totalorder %s2504_s24, 0 }
 0x26a   : > { %p2515_p1 = scmp.ge.s32.totalorder %s2003_s17, 2  ;;  %s1292_s18 = scalar_lea.sflag [#allocation4], %s1291_s29 }
 0x26c   : > { %p1664_p5 = pnand %p2515_p1, %p2514_p4 }
 0x26e   : > { %p1665_p0 = pneg %p1664_p5 }
 0x270   : > { %1978 = dma.done.wait (%p1665_p0), %s1292_s18, 128  }
 0x271   : > { %1980 = vsyncadd (%p1665_p0), %s1292_s18, 4294967168  ;;  %s20_s17 = sadd.s32 1, %s2003_s17   ;;  %s2516_s12 = smov %s1987_s13 }
 0x272   : > { %p17_p10 = scmp.ge.s32.totalorder %s20_s17, 4   ;;  %s2517_s13 = smov %s1991_s14 }
 0x273   : > { %s2518_s14 = smov %s2150_s4  ;;  %s2519_s15 = smov %s1999_s16 }
 0x274   : > { %s2520_s16 = smov %s2522_s26  ;;  %19 = sbr.rel (!%p17_p10) target bundleno = 9 (0x9), region = 91 }
 0x279   :  { %1297 = vsyncpa [#allocation3], 1 }
 0x27a   :  { %1299 = vsyncpa [#allocation3 + $0x1], 1 }
 0x27b   :  { %1300 = vsyncpa [#allocation6], 1 }
 0x27c   :  { %1302 = vsyncpa [#allocation6 + $0x1], 1 }
 0x27d   :  { %1303 = vsyncpa [#allocation4], 1 }
 0x27e   :  { %1305 = vsyncpa [#allocation4 + $0x1], 1 }

</bundles_post_ra>
